<compile_context>
chip_gen: v6e
topology: v6e:2x2x1
jax: 0.10.0
libtpu: 0.0.40
codegen_flags: <defaults>
</compile_context>

<pallas_src>
import jax
import jax.numpy as jnp
from jax.experimental import pallas as pl
from jax.experimental.pallas import tpu as pltpu

ALPHA = 0.25
GAMMA = 2.0
LANES = 128
SENTINEL = -1.0e4   # finite in f16/bf16/f32; exp(-|s|) == 0 and sigmoid(s) == 0 in f32


def _round_up(n, m):
    return (n + m - 1) // m * m


def _make_kernel(n_inner, tile_rows, alpha, gamma):
    # Fold  w_alpha = alpha if t==1 else 1-alpha  into  (1-a) + (2a-1)*t.
    c0 = float(1.0 - alpha)
    c1 = float(2.0 * alpha - 1.0)
    gamma = float(gamma)
    n_sub = tile_rows // 8

    def kernel(x_ref, t_ref, partial_ref, acc_ref):
        i = pl.program_id(1)

        @pl.when(i == 0)
        def _init():
            acc_ref[...] = jnp.zeros_like(acc_ref)

        xb = x_ref[...].astype(jnp.float32)       # (tile_rows, 128) logits
        tb = t_ref[...].astype(jnp.float32)       # (tile_rows, 128) labels in {0,1}

        # sigmoid + stable softplus share a single exp (one EUP transcendental).
        e = jnp.exp(-jnp.abs(xb))
        denom_inv = pl.reciprocal(1.0 + e, approx=True)
        p = jnp.where(xb >= 0.0, denom_inv, e * denom_inv)      # sigmoid(x)

        # NOTE: algebraic (select-free) forms assume hard 0/1 labels, matching
        # the reference's torch.eq(targets, 1.0).
        w_alpha = c0 + c1 * tb
        base = p + tb - 2.0 * tb * p                            # (1-p) if t==1 else p
        if gamma == 2.0:
            w_focal = base * base                               # VPU square, no pow
        else:
            w_focal = jnp.power(base, gamma)

        # Numerically stable BCE-with-logits: max(x,0) - x*t + log1p(exp(-|x|)).
        bce = jnp.maximum(xb, 0.0) - xb * tb + jnp.log1p(e)

        # Sentinel-padded elements: bce == 0 and w_focal == 0 -> contribute 0.
        fl = w_alpha * w_focal * bce
        acc_ref[...] += jnp.sum(fl.reshape(n_sub, 8, LANES), axis=0)

        @pl.when(i == n_inner - 1)
        def _finalize():
            partial_ref[...] = acc_ref[...]

    return kernel


def focal_loss(outputs, y, *, alpha=ALPHA, gamma=GAMMA, block_rows=4096,
               num_parallel=2, min_pallas_batch=65536):
    """outputs: (B, 2) float logits; y: (B,) hard binary labels -> scalar f32."""
    B = int(outputs.shape[0])
    if B < min_pallas_batch:
        # Tiny batches: slice/pad fusions + pallas_call launch overhead dominate.
        return focal_loss_ref(outputs, y, alpha, gamma)

    assert block_rows % 32 == 0, "block_rows must be a multiple of 32"

    rows = pl.cdiv(B, LANES)
    if rows <= block_rows:
        tile_rows = _round_up(int(rows), 32)
        n_tiles = 1
    else:
        tile_rows = int(block_rows)
        n_tiles = int(pl.cdiv(rows, tile_rows))

    if num_parallel > 1 and n_tiles >= num_parallel:
        n_tiles = _round_up(n_tiles, num_parallel)   # keep all TCs busy (v7x)
        n_outer = int(num_parallel)
    else:
        n_outer = 1
    n_inner = n_tiles // n_outer
    rows_padded = n_tiles * tile_rows

    # Sentinel padding: x very negative, t = 0  =>  padded elements contribute 0.
    pad = rows_padded * LANES - B
    x = jnp.pad(outputs[:, 1], (0, pad), constant_values=SENTINEL)
    x = x.reshape(rows_padded, LANES)                        # native logit dtype
    t = jnp.pad(y.astype(jnp.int8), (0, pad)).reshape(rows_padded, LANES)

    kernel = _make_kernel(n_inner, tile_rows, alpha, gamma)

    n_elems = rows_padded * LANES
    cost = pl.CostEstimate(
        flops=25 * n_elems,
        transcendentals=3 * n_elems,
        bytes_accessed=(x.size * x.dtype.itemsize) + t.size + n_outer * 8 * LANES * 4,
    )

    partials = pl.pallas_call(
        kernel,
        out_shape=jax.ShapeDtypeStruct((n_outer * 8, LANES), jnp.float32),
        grid_spec=pltpu.PrefetchScalarGridSpec(
            num_scalar_prefetch=0,
            grid=(n_outer, n_inner),
            in_specs=[
                pl.BlockSpec((tile_rows, LANES), lambda o, i: (o * n_inner + i, 0)),
                pl.BlockSpec((tile_rows, LANES), lambda o, i: (o * n_inner + i, 0)),
            ],
            out_specs=pl.BlockSpec((8, LANES), lambda o, i: (o, 0)),
            scratch_shapes=[pltpu.VMEM((8, LANES), jnp.float32)],
        ),
        compiler_params=pltpu.CompilerParams(
            dimension_semantics=("parallel", "arbitrary")),
        cost_estimate=cost,
    )(x, t)

    # Each outer group wrote one (8,128) partial block; reduce + mean on host side.
    return jnp.sum(partials) / jnp.float32(B)


def focal_loss_ref(outputs, y, alpha=ALPHA, gamma=GAMMA):
    """Pure-JAX reference mirroring the PyTorch forward (for sanity checking)."""
    p = jax.nn.sigmoid(outputs[:, 1].astype(jnp.float32))
    t = y.astype(jnp.float32)
    w_alpha = jnp.where(t == 1.0, alpha, 1.0 - alpha)
    w_focal = jnp.where(t == 1.0, 1.0 - p, p) ** gamma
    bce = -(t * jnp.log(p) + (1.0 - t) * jnp.log(1.0 - p))
    return jnp.mean(w_alpha * w_focal * bce)


if __name__ == "__main__":
    key = jax.random.PRNGKey(0)
    k1, k2, k3, k4 = jax.random.split(key, 4)

    # Small shape implied by the module: (batch, 2) logits + (batch,) labels.
    B = 8
    outputs = jax.random.normal(k1, (B, 2), dtype=jnp.float32)
    y = jax.random.bernoulli(k2, p=0.5, shape=(B,)).astype(jnp.int32)

    loss = jax.block_until_ready(focal_loss(outputs, y, min_pallas_batch=0))
    ref = focal_loss_ref(outputs, y)
    assert jnp.allclose(loss, ref, atol=1e-6, rtol=5e-3), (loss, ref)

    # Larger case: sentinel padding, multi-tile grid, and the (parallel x
    # arbitrary) grid with n_tiles rounded up to a multiple of num_parallel.
    B2 = 36000
    outputs2 = jax.random.normal(k3, (B2, 2), dtype=jnp.float32)
    y2 = jax.random.bernoulli(k4, p=0.5, shape=(B2,)).astype(jnp.int32)

    loss2 = jax.block_until_ready(
        focal_loss(outputs2, y2, block_rows=32, num_parallel=2, min_pallas_batch=0))
    ref2 = focal_loss_ref(outputs2, y2)
    assert jnp.allclose(loss2, ref2, atol=1e-6, rtol=5e-3), (loss2, ref2)

    print("KERNEL_OK")
</pallas_src>

<mosaic_0001>
module attributes {stable_mosaic.version = 11 : i64} {
  func.func @kernel(%arg0: i32, %arg1: i32, %arg2: memref<32x128xf32, #tpu.memory_space<vmem>>, %arg3: memref<32x128xi8, #tpu.memory_space<vmem>>, %arg4: memref<8x128xf32, #tpu.memory_space<vmem>>, %arg5: memref<8x128xf32, #tpu.memory_space<vmem>>) attributes {dimension_semantics = [#tpu.dimension_semantics<parallel>, #tpu.dimension_semantics<arbitrary>], iteration_bounds = array<i64: 1, 1>, scalar_prefetch = 0 : i64, scratch_operands = 1 : i64, tpu.core_type = #tpu.core_type<tc>, window_params = [{transform_indices = @transform_0, window_bounds = array<i64: 32, 128>}, {transform_indices = @transform_1, window_bounds = array<i64: 32, 128>}, {transform_indices = @transform_2, window_bounds = array<i64: 8, 128>}]} {
    %c0_i32 = arith.constant 0 : i32
    %0 = arith.cmpi eq, %arg1, %c0_i32 : i32
    %1 = arith.extui %0 : i1 to i32
    %c0_i32_0 = arith.constant 0 : i32
    %2 = arith.cmpi ne, %1, %c0_i32_0 : i32
    scf.if %2 {
      %cst_17 = arith.constant 0.000000e+00 : f32
      %43 = vector.broadcast %cst_17 : f32 to vector<8x128xf32>
      %c0_18 = arith.constant 0 : index
      %c0_19 = arith.constant 0 : index
      %44 = vector.load %arg5[%c0_18, %c0_19] : memref<8x128xf32, #tpu.memory_space<vmem>>, vector<8x128xf32>
      tpu.vector_store %arg5[%c0_18, %c0_19], %43 {strides = array<i32>} : memref<8x128xf32, #tpu.memory_space<vmem>>, vector<8x128xf32>,
    } else {
    }
    %c0 = arith.constant 0 : index
    %c0_1 = arith.constant 0 : index
    %3 = vector.load %arg2[%c0, %c0_1] : memref<32x128xf32, #tpu.memory_space<vmem>>, vector<32x128xf32>
    %c0_2 = arith.constant 0 : index
    %c0_3 = arith.constant 0 : index
    %4 = vector.load %arg3[%c0_2, %c0_3] : memref<32x128xi8, #tpu.memory_space<vmem>>, vector<32x128xi8>
    %5 = arith.sitofp %4 : vector<32x128xi8> to vector<32x128xf32>
    %6 = math.absf %3 : vector<32x128xf32>
    %cst = arith.constant 0.000000e+00 : f32
    %7 = vector.broadcast %cst : f32 to vector<32x128xf32>
    %8 = arith.subf %7, %6 : vector<32x128xf32>
    %9 = math.exp %8 : vector<32x128xf32>
    %cst_4 = arith.constant 1.000000e+00 : f32
    %10 = vector.broadcast %cst_4 : f32 to vector<32x128xf32>
    %11 = arith.addf %10, %9 : vector<32x128xf32>
    %12 = tpu.reciprocal %11 {approx = true} : vector<32x128xf32> -> vector<32x128xf32>
    %cst_5 = arith.constant 0.000000e+00 : f32
    %13 = vector.broadcast %cst_5 : f32 to vector<32x128xf32>
    %14 = arith.cmpf oge, %3, %13 : vector<32x128xf32>
    %15 = arith.mulf %9, %12 : vector<32x128xf32>
    %16 = arith.select %14, %12, %15 : vector<32x128xi1>, vector<32x128xf32>
    %cst_6 = arith.constant -5.000000e-01 : f32
    %17 = vector.broadcast %cst_6 : f32 to vector<32x128xf32>
    %18 = arith.mulf %17, %5 : vector<32x128xf32>
    %cst_7 = arith.constant 7.500000e-01 : f32
    %19 = vector.broadcast %cst_7 : f32 to vector<32x128xf32>
    %20 = arith.addf %19, %18 : vector<32x128xf32>
    %21 = arith.addf %16, %5 : vector<32x128xf32>
    %cst_8 = arith.constant 2.000000e+00 : f32
    %22 = vector.broadcast %cst_8 : f32 to vector<32x128xf32>
    %23 = arith.mulf %22, %5 : vector<32x128xf32>
    %24 = arith.mulf %23, %16 : vector<32x128xf32>
    %25 = arith.subf %21, %24 : vector<32x128xf32>
    %26 = arith.mulf %25, %25 : vector<32x128xf32>
    %cst_9 = arith.constant 0.000000e+00 : f32
    %27 = vector.broadcast %cst_9 : f32 to vector<32x128xf32>
    %28 = arith.maximumf %3, %27 : vector<32x128xf32>
    %29 = arith.mulf %3, %5 : vector<32x128xf32>
    %30 = arith.subf %28, %29 : vector<32x128xf32>
    %31 = math.log1p %9 : vector<32x128xf32>
    %32 = arith.addf %30, %31 : vector<32x128xf32>
    %33 = arith.mulf %20, %26 : vector<32x128xf32>
    %34 = arith.mulf %33, %32 : vector<32x128xf32>
    %c0_10 = arith.constant 0 : index
    %c0_11 = arith.constant 0 : index
    %35 = vector.load %arg5[%c0_10, %c0_11] : memref<8x128xf32, #tpu.memory_space<vmem>>, vector<8x128xf32>
    %36 = vector.shape_cast %34 : vector<32x128xf32> to vector<4x8x128xf32>
    %cst_12 = arith.constant dense<0.000000e+00> : vector<8x128xf32>
    %37 = vector.multi_reduction <add>, %36, %cst_12 [0] : vector<4x8x128xf32> to vector<8x128xf32>
    %38 = arith.addf %35, %37 : vector<8x128xf32>
    %c0_13 = arith.constant 0 : index
    %c0_14 = arith.constant 0 : index
    %39 = vector.load %arg5[%c0_13, %c0_14] : memref<8x128xf32, #tpu.memory_space<vmem>>, vector<8x128xf32>
    tpu.vector_store %arg5[%c0_13, %c0_14], %38 {strides = array<i32>} : memref<8x128xf32, #tpu.memory_space<vmem>>, vector<8x128xf32>,
    %c0_i32_15 = arith.constant 0 : i32
    %40 = arith.cmpi eq, %arg1, %c0_i32_15 : i32
    %41 = arith.extui %40 : i1 to i32
    %c0_i32_16 = arith.constant 0 : i32
    %42 = arith.cmpi ne, %41, %c0_i32_16 : i32
    scf.if %42 {
      %c0_17 = arith.constant 0 : index
      %c0_18 = arith.constant 0 : index
      %43 = vector.load %arg5[%c0_17, %c0_18] : memref<8x128xf32, #tpu.memory_space<vmem>>, vector<8x128xf32>
      %c0_19 = arith.constant 0 : index
      %c0_20 = arith.constant 0 : index
      %44 = vector.load %arg4[%c0_19, %c0_20] : memref<8x128xf32, #tpu.memory_space<vmem>>, vector<8x128xf32>
      tpu.vector_store %arg4[%c0_19, %c0_20], %43 {strides = array<i32>} : memref<8x128xf32, #tpu.memory_space<vmem>>, vector<8x128xf32>,
    } else {
    }
    return
  }
  func.func @transform_0(%arg0: i32, %arg1: i32) -> (i32, i32) {
    %c1_i32 = arith.constant 1 : i32
    %0 = arith.muli %arg0, %c1_i32 : i32
    %1 = arith.addi %0, %arg1 : i32
    %c0_i32 = arith.constant 0 : i32
    %c0_i32_0 = arith.constant 0 : i32
    return %1, %c0_i32 : i32, i32
  }
  func.func @transform_1(%arg0: i32, %arg1: i32) -> (i32, i32) {
    %c1_i32 = arith.constant 1 : i32
    %0 = arith.muli %arg0, %c1_i32 : i32
    %1 = arith.addi %0, %arg1 : i32
    %c0_i32 = arith.constant 0 : i32
    %c0_i32_0 = arith.constant 0 : i32
    return %1, %c0_i32 : i32, i32
  }
  func.func @transform_2(%arg0: i32, %arg1: i32) -> (i32, i32) {
    %c0_i32 = arith.constant 0 : i32
    %c0_i32_0 = arith.constant 0 : i32
    return %arg0, %c0_i32 : i32, i32
  }
}

</mosaic_0001>

<bundles_post_ra>
// kernel: tpu_custom_call.1
= control target key start
LH: loop header
LB: loop body
LE: loop exit
PB: predicated region body
PF: predicated region fallthrough
CT: control target
= control target key end

     0   :  { %7 = vsyncpa [#allocation4], 0  ;;  %s461_s0 = inlined_call_operand.hbm [shape: f32[32,128], index: 0, kind: input, shape index: {}]   ;;  %s462_s1 = inlined_call_operand.hbm [shape: s8[32,128], index: 1, kind: input, shape index: {}]   ;;  %s463_s2 = inlined_call_operand.hbm [shape: f32[8,128], index: 2, kind: output, shape index: {}]  }
   0x1   :  { %8 = vsyncpa [#allocation7], 0 }
   0x2   :  { %9 = vsyncpa [#allocation5], 0  ;;  %s312_s9 = smov [#allocation3]  }
   0x3   :  { %s19_s10 = sshll.u32 %s312_s9, 4  ;;  %s20_s10 = int_to_ptr.vmem [resolvable:$true] %s19_s10 }
   0x4   :  { %s254_s11 = scalar_lea.vmem %s20_s10, 512  ;;  %p259_p1 = scmp.lt.s32.totalorder %s20_s10, %s20_s10 }
   0x5   :  { %p255_p0 = scmp.ne.s32.totalorder %s20_s10, %s254_s11  ;;  %p260_p2 = scmp.lt.s32.totalorder %s254_s11, %s254_s11 }
   0x7   :  { %p261_p3 = por %p260_p2, %p259_p1 }
   0x9   :  { %p262_p4 = pnand %p261_p3, %p255_p0 }
   0xb   :  { %265 = shalt.err (!%p262_p4)
}
   0xc   :  { %s313_s12 = smov 128   ;;  %s314_s13 = smov 8  }
   0xd   :  { %25 = dma.hbm_to_vmem [thread:$0]  %s461_s0, 512, %s20_s10, [#allocation4], %s313_s12, %s313_s12, %s314_s13  }
   0xe   :  { %s315_s16 = smov [#allocation6]  }
   0xf   :  { %s35_s17 = sshll.u32 %s315_s16, 4  ;;  %s36_s17 = int_to_ptr.vmem [resolvable:$true] %s35_s17 }
  0x10   :  { %s274_s18 = scalar_lea.vmem %s36_s17, 128  ;;  %p279_p6 = scmp.lt.s32.totalorder %s36_s17, %s36_s17 }
  0x11   :  { %p275_p5 = scmp.ne.s32.totalorder %s36_s17, %s274_s18  ;;  %p280_p7 = scmp.lt.s32.totalorder %s274_s18, %s274_s18 }
  0x13   :  { %p281_p8 = por %p280_p7, %p279_p6 }
  0x15   :  { %p282_p9 = pnand %p281_p8, %p275_p5 }
  0x17   :  { %285 = shalt.err (!%p282_p9)
}
  0x18   :  { %38 = dma.hbm_to_vmem [thread:$0]  %s462_s1, 128, %s36_s17, [#allocation7]  }
  0x19   :  { %306 = dma.done.wait [#allocation4], 512  }
  0x1a   :  { %307 = vsyncadd [#allocation4], 4294966784 }
  0x1b   :  { %308 = dma.done.wait [#allocation7], 128  }
  0x1c   :  { %309 = vsyncadd [#allocation7], 4294967168  ;;  %v338_v0 = vld [vmem:[#allocation3] sm:$0xff]  ;;  %v340_v1 = vld [vmem:[#allocation3 + $0x8] sm:$0xff]  ;;  %s316_s0 = smov [#allocation8]  }
  0x1d   :  { %v342_v2 = vld [vmem:[#allocation3 + $0x10] sm:$0xff]  ;;  %v344_v3 = vld [vmem:[#allocation3 + $0x18] sm:$0xff]  ;;  %v66_v4 = vand.u32 2147483647, %v338_v0  ;;  %v67_v5 = vand.u32 2147483647, %v340_v1 }
  0x1e   :  { %v68_v6 = vand.u32 2147483647, %v342_v2  ;;  %v69_v7 = vand.u32 2147483647, %v344_v3  ;;  %v57_v16 = vld [vmem:[#allocation6] sm:$0xff]  ;;  %vm90_vm0 = vcmp.ge.f32.partialorder %v338_v0, 0.0 }
  0x1f   :  { %v70_v8 = vsub.f32 0.0, %v66_v4  ;;  %v71_v9 = vsub.f32 0.0, %v67_v5  ;;  %v58_v17 = vunpack.c.0.s8 %v57_v16  ;;  %v59_v18 = vunpack.c.1.s8 %v57_v16  ;;  %s207_s1 = sshll.u32 %s316_s0, 4  ;;  %s208_s1 = int_to_ptr.vmem [resolvable:$true] %s207_s1 }
  0x20   :  { %v72_v10 = vsub.f32 0.0, %v68_v6  ;;  %v73_v11 = vsub.f32 0.0, %v69_v7  ;;  %v60_v21 = vunpack.c.2.s8 %v57_v16  ;;  %v61_v24 = vunpack.c.3.s8 %v57_v16  ;;  %s286_s21 = scalar_lea.vmem %s208_s1, 128  ;;  %p291_p11 = scmp.lt.s32.totalorder %s208_s1, %s208_s1 }
  0x21   :  { %v74_v12 = vmul.f32 1.442695, %v70_v8  ;;  %v76_v13 = vmul.f32 1.442695, %v71_v9  ;;  %v357_v25 = vcvt.s32.f32 %v58_v17  ;;  %v362_v28 = vcvt.s32.f32 %v59_v18  ;;  %p287_p10 = scmp.ne.s32.totalorder %s208_s1, %s286_s21  ;;  %p292_p12 = scmp.lt.s32.totalorder %s286_s21, %s286_s21 }
  0x22   :  { %v78_v14 = vmul.f32 1.442695, %v72_v10  ;;  %v80_v15 = vmul.f32 1.442695, %v73_v11  ;;  %v367_v32 = vcvt.s32.f32 %v60_v21  ;;  %v370_v34 = vcvt.s32.f32 %v61_v24 }
  0x23   :  { %222 = vpow2.f32 %v74_v12  ;;  %v102_v31 = vmul.f32 -0.5, %v357_v25  ;;  %v103_v33 = vmul.f32 -0.5, %v362_v28  ;;  %v114_v38 = vmul.f32 2.0, %v357_v25  ;;  %p293_p13 = por %p292_p12, %p291_p11 }
  0x24   :  { %224 = vpow2.f32 %v76_v13  ;;  %v104_v35 = vmul.f32 -0.5, %v367_v32  ;;  %v105_v36 = vmul.f32 -0.5, %v370_v34  ;;  %vm91_vm1 = vcmp.ge.f32.partialorder %v340_v1, 0.0 }
  0x25   :  { %226 = vpow2.f32 %v78_v14  ;;  %v375_v37 = vadd.f32 0.75, %v102_v31  ;;  %v379_v39 = vadd.f32 0.75, %v103_v33  ;;  %v115_v40 = vmul.f32 2.0, %v362_v28  ;;  %p294_p0 = pnand %p293_p13, %p287_p10 }
  0x26   :  { %228 = vpow2.f32 %v80_v15  ;;  %vm92_vm2 = vcmp.ge.f32.partialorder %v342_v2, 0.0  ;;  %v130_v42 = vmax.f32 %v338_v0, 0.0  ;;  %v131_v43 = vmax.f32 %v340_v1, 0.0 }
  0x27   :  { %vm93_vm3 = vcmp.ge.f32.partialorder %v344_v3, 0.0  ;;  %v132_v45 = vmax.f32 %v342_v2, 0.0  ;;  %v133_v46 = vmax.f32 %v344_v3, 0.0  ;;  %v134_v49 = vmul.f32 %v357_v25, %v338_v0 }
  0x28   :  { %v135_v50 = vmul.f32 %v362_v28, %v340_v1  ;;  %v136_v51 = vmul.f32 %v367_v32, %v342_v2  ;;  %v137_v52 = vmul.f32 %v370_v34, %v344_v3  ;;  %v400_v53 = vadd.f32 0.75, %v104_v35 }
  0x29   :  { %v404_v57 = vadd.f32 0.75, %v105_v36  ;;  %v116_v61 = vmul.f32 2.0, %v367_v32  ;;  %v117_v62 = vmul.f32 2.0, %v370_v34  ;;  %v138_v6 = vsub.f32 %v130_v42, %v134_v49 }
  0x2a   :  { %v139_v7 = vsub.f32 %v131_v43, %v135_v50  ;;  %v140_v8 = vsub.f32 %v132_v45, %v136_v51  ;;  %v141_v9 = vsub.f32 %v133_v46, %v137_v52 }
  0x30   :  { %v350_v19 = vpop.eup %222 }
  0x31   :  { %v352_v20 = vpop.eup %224  ;;  %v82_v22 = vadd.f32 1.0, %v350_v19  ;;  %v145_v41 = vmul.f32 -0.5, %v350_v19  ;;  %v148_v55 = vand.u32 2147483647, %v350_v19 }
  0x32   :  { %v355_v23 = vpop.eup %226  ;;  %v83_v26 = vadd.f32 1.0, %v352_v20  ;;  %v154_v44 = vmul.f32 -0.5, %v352_v20  ;;  %v157_v56 = vand.u32 2147483647, %v352_v20 }
  0x33   :  { %v360_v27 = vpop.eup %228  ;;  %v84_v29 = vadd.f32 1.0, %v355_v23  ;;  %230 = vrcp.f32 %v82_v22  ;;  %v163_v47 = vmul.f32 -0.5, %v355_v23  ;;  %v146_v54 = vadd.f32 1.0, %v145_v41 }
  0x34   :  { %v85_v30 = vadd.f32 1.0, %v360_v27  ;;  %232 = vrcp.f32 %v83_v26  ;;  %v172_v48 = vmul.f32 -0.5, %v360_v27  ;;  %v155_v58 = vadd.f32 1.0, %v154_v44 }
  0x35   :  { %234 = vrcp.f32 %v84_v29  ;;  %v166_v59 = vand.u32 2147483647, %v355_v23  ;;  %v175_v60 = vand.u32 2147483647, %v360_v27  ;;  %v164_v63 = vadd.f32 1.0, %v163_v47 }
  0x36   :  { %236 = vrcp.f32 %v85_v30  ;;  %v173_v4 = vadd.f32 1.0, %v172_v48  ;;  %v147_v12 = vmul.f32 %v350_v19, %v146_v54  ;;  %vm412_vm4 = vcmp.lt.f32.partialorder %v148_v55, 0.0004427343 }
  0x37   :  { %238 = vlog2.f32 %v82_v22  ;;  %vm416_vm5 = vcmp.lt.f32.partialorder %v157_v56, 0.0004427343  ;;  %v156_v17 = vmul.f32 %v352_v20, %v155_v58  ;;  %vm422_vm6 = vcmp.lt.f32.partialorder %v166_v59, 0.0004427343 }
  0x38   :  { %240 = vlog2.f32 %v83_v26  ;;  %vm426_vm7 = vcmp.lt.f32.partialorder %v175_v60, 0.0004427343  ;;  %v165_v26 = vmul.f32 %v355_v23, %v164_v63 }
  0x39   :  { %242 = vlog2.f32 %v84_v29  ;;  %v174_v29 = vmul.f32 %v360_v27, %v173_v4 }
  0x3a   :  { %244 = vlog2.f32 %v85_v30 }
  0x40   :  { %v231_v5 = vpop.eup %230 }
  0x41   :  { %v233_v10 = vpop.eup %232  ;;  %v94_v11 = vmul.f32 %v231_v5, %v350_v19 }
  0x42   :  { %v235_v15 = vpop.eup %234  ;;  %v95_v16 = vmul.f32 %v233_v10, %v352_v20 }
  0x43   :  { %v237_v19 = vpop.eup %236  ;;  %v96_v22 = vmul.f32 %v235_v15, %v355_v23  ;;  %v98_v24 = vsel %vm90_vm0, %v231_v5, %v94_v11 }
  0x44   :  { %v239_v30 = vpop.eup %238  ;;  %v97_v20 = vmul.f32 %v237_v19, %v360_v27  ;;  %v99_v31 = vsel %vm91_vm1, %v233_v10, %v95_v16  ;;  %v110_v33 = vadd.f32 %v98_v24, %v357_v25  ;;  %v118_v35 = vmul.f32 %v114_v38, %v98_v24 }
  0x45   :  { %v241_v36 = vpop.eup %240  ;;  %v100_v41 = vsel %vm92_vm2, %v235_v15, %v96_v22  ;;  %v111_v0 = vadd.f32 %v99_v31, %v362_v28  ;;  %v119_v42 = vmul.f32 %v115_v40, %v99_v31  ;;  %v144_v43 = vmul.f32 0.6931472, %v239_v30 }
  0x46   :  { %v243_v23 = vpop.eup %242  ;;  %v101_v44 = vsel %vm93_vm3, %v237_v19, %v97_v20  ;;  %v112_v27 = vadd.f32 %v100_v41, %v367_v32  ;;  %v120_v45 = vmul.f32 %v116_v61, %v100_v41  ;;  %v122_v1 = vsub.f32 %v110_v33, %v118_v35 }
  0x47   :  { %v245_v46 = vpop.eup %244  ;;  %v113_v25 = vadd.f32 %v101_v44, %v370_v34  ;;  %v121_v38 = vmul.f32 %v117_v62, %v101_v44  ;;  %v123_v47 = vsub.f32 %v111_v0, %v119_v42  ;;  %v150_v2 = vsel %vm412_vm4, %v147_v12, %v144_v43 }
  0x48   :  { %v124_v48 = vsub.f32 %v112_v27, %v120_v45  ;;  %v126_v28 = vmul.f32 %v122_v1, %v122_v1  ;;  %v153_v40 = vmul.f32 0.6931472, %v241_v36  ;;  %v162_v49 = vmul.f32 0.6931472, %v243_v23 }
  0x49   :  { %v125_v50 = vsub.f32 %v113_v25, %v121_v38  ;;  %v127_v51 = vmul.f32 %v123_v47, %v123_v47  ;;  %v171_v3 = vmul.f32 0.6931472, %v245_v46  ;;  %v178_v52 = vadd.f32 %v150_v2, %v138_v6 }
  0x4a   :  { %v128_v54 = vmul.f32 %v124_v48, %v124_v48  ;;  %v159_v32 = vsel %vm416_vm5, %v156_v17, %v153_v40  ;;  %v168_v34 = vsel %vm422_vm6, %v165_v26, %v162_v49  ;;  %v182_v55 = vmul.f32 %v126_v28, %v375_v37 }
  0x4b   :  { %v129_v56 = vmul.f32 %v125_v50, %v125_v50  ;;  %v177_v58 = vsel %vm426_vm7, %v174_v29, %v171_v3  ;;  %v179_v59 = vadd.f32 %v159_v32, %v139_v7  ;;  %v180_v60 = vadd.f32 %v168_v34, %v140_v8 }
  0x4c   :  { %v181_v61 = vadd.f32 %v177_v58, %v141_v9  ;;  %v183_v62 = vmul.f32 %v127_v51, %v379_v39  ;;  %v184_v63 = vmul.f32 %v128_v54, %v400_v53  ;;  %v186_v4 = vmul.f32 %v182_v55, %v178_v52 }
  0x4d   :  { %v185_v5 = vmul.f32 %v129_v56, %v404_v57 }
  0x4e   :  { %v187_v6 = vmul.f32 %v183_v62, %v179_v59  ;;  %v188_v10 = vmul.f32 %v184_v63, %v180_v60 }
  0x4f   :  { %v189_v11 = vmul.f32 %v185_v5, %v181_v61 }
  0x50   :  { %v191_v12 = vadd.f32 %v187_v6, %v186_v4 }
  0x52   :  { %v192_v37 = vadd.f32 %v191_v12, %v188_v10 }
  0x54   :  { %v193_v13 = vadd.f32 %v192_v37, %v189_v11 }
  0x56   :  { %200 = vst [vmem:[#allocation8] sm:$0xff] %v193_v13 }
  0x57   :  { %297 = shalt.err (!%p294_p0)
}
  0x58   :  { %210 = dma.vmem_to_hbm [thread:$0]  %s208_s1, 128, %s463_s2, [#allocation5]  }
  0x59   :  { %310 = dma.done.wait [#allocation5], 128  }
  0x5a   :  { %311 = vsyncadd [#allocation5], 4294967168 }
  0x5b   :  { %214 = vsyncpa [#allocation4], 1 }
  0x5c   :  { %215 = vsyncpa [#allocation7], 1 }
  0x5d   :  { %216 = vsyncpa [#allocation5], 1 }

</bundles_post_ra>
